<compile_context>
chip_gen: v7x
topology: tpu7x:2x2x1
jax: 0.10.0
libtpu: 0.0.40
codegen_flags: <defaults>
</compile_context>

<pallas_src>
import numpy as np
import jax
import jax.numpy as jnp
from jax.experimental import pallas as pl
from jax.experimental.pallas import tpu as pltpu


# ------------------------------ constants -------------------------------------

C_IN, C_FEAT = 4, 32          # image backbone in/out channels
VOCAB, C_TXT = 64, 32         # text vocab / hidden size
EPS = 1e-12                   # torch F.normalize default eps


# ----------------------------- Pallas kernel ----------------------------------

def clip_head_kernel(img_ref, wb_ref, emb_ref, ids_ref, out_ref):
    """Fused image + text heads (single invocation, no grid).

    img_ref : (B, C_in, H*W)   free view of NCHW pixels
    wb_ref  : (C_in+1, C_feat) stand-in 1x1-conv [weight; bias]
    emb_ref : (V, C_txt)       stand-in text-embedding table
    ids_ref : (B, T) int32     token ids
    out_ref : (B, C_feat + C_txt)  [image embedding | text embedding]
    """
    cin = wb_ref.shape[0] - 1

    # ---------------- image branch ----------------
    # GlobalAveragePooling(dim=2) first (valid: linear stand-in backbone):
    # lane-axis reduce over H*W (XLU), then the tiny (B,Cin)x(Cin,Cf) conv on
    # the otherwise-idle MXU, bias broadcast-added from the last wb row.
    pooled = jnp.mean(img_ref[...], axis=-1)                     # (B, C_in)
    wb = wb_ref[...]                                             # (C_in+1, C_feat)
    feat = jnp.dot(pooled, wb[:cin, :],
                   preferred_element_type=jnp.float32) + wb[cin:cin + 1, :]

    # ---------------- text branch -----------------
    # Stand-in text backbone = embedding lookup; then F.normalize(dim=-1) and
    # AdaptiveAvgPool1d(1) over the sequence.  Row-normalize the whole table
    # once (EUP rsqrt), then average the selected rows with a one-hot-count
    # matmul — no gather, no (B, T, C) intermediate.
    emb = emb_ref[...]                                           # (V, C)
    sumsq = jnp.sum(emb * emb, axis=-1, keepdims=True)           # (V, 1)
    emb_n = emb * jax.lax.rsqrt(jnp.maximum(sumsq, EPS * EPS))   # == x / max(||x||, eps)

    ids = ids_ref[...]                                           # (B, T) int32
    batch, seq = ids.shape
    vocab = emb.shape[0]
    iota_v = jax.lax.broadcasted_iota(jnp.int32, (batch, seq, vocab), 2)
    counts = jnp.sum((ids[:, :, None] == iota_v).astype(jnp.float32),
                     axis=1)                                     # (B, V) token counts
    txt = jnp.dot(counts, emb_n,
                  preferred_element_type=jnp.float32) * (1.0 / seq)

    # Single packed store (one wide vst instead of two narrow masked ones).
    out_ref[...] = jnp.concatenate([feat, txt], axis=-1)


# ------------------------------- wrapper --------------------------------------

def clip_heads(image_nchw, img_w, img_b, txt_embed, text_ids):
    B, Cin, H, W = image_nchw.shape
    Cf = img_w.shape[1]
    V, Ct = txt_embed.shape
    T = text_ids.shape[1]

    # Free view of NCHW (no transpose, no data movement outside the kernel).
    img = image_nchw.reshape(B, Cin, H * W)
    # Fold bias into the weight operand: one fewer DMA'd input.
    wb = jnp.concatenate([img_w, img_b], axis=0)                 # (Cin+1, Cf)

    flops = (B * Cin * H * W            # GAP reduce
             + 2 * B * Cin * Cf         # pointwise conv matmul
             + 2 * B * T * V            # one-hot compare + count sum
             + 3 * V * Ct               # table normalization
             + 2 * B * V * Ct)          # counts @ normalized table
    bytes_accessed = 4 * (B * Cin * H * W + (Cin + 1) * Cf + V * Ct
                          + B * T + B * (Cf + Ct))

    vmem = pl.BlockSpec(memory_space=pltpu.MemorySpace.VMEM)
    out = pl.pallas_call(
        clip_head_kernel,
        out_shape=jax.ShapeDtypeStruct((B, Cf + Ct), jnp.float32),
        in_specs=[vmem, vmem, vmem, vmem],
        out_specs=vmem,
        cost_estimate=pl.CostEstimate(flops=flops, transcendentals=V,
                                      bytes_accessed=bytes_accessed),
    )(img, wb, txt_embed, text_ids)

    # Free slices in the wrapper.
    return out[:, :Cf], out[:, Cf:]


# ------------------------------- "module" -------------------------------------

def init_params(key):
    k1, k2, k3 = jax.random.split(key, 3)
    return {
        # TODO(synk): real image_model / text_model are external RWKV backbones;
        # these are deterministic linear stand-ins with the same interface shapes.
        "img_w": jax.random.normal(k1, (C_IN, C_FEAT), jnp.float32) * 0.1,
        "img_b": jax.random.normal(k2, (1, C_FEAT), jnp.float32) * 0.1,
        "txt_embed": jax.random.normal(k3, (VOCAB, C_TXT), jnp.float32) * 0.1,
        # nn.Parameter(torch.ones([]) * np.log(1/0.07))
        "logit_scale": jnp.asarray(np.log(1.0 / 0.07), jnp.float32),
    }


def get_model_forward(params, image, text):
    image_embedding, text_embedding = clip_heads(
        image, params["img_w"], params["img_b"], params["txt_embed"], text)
    logit_scale_exp = jnp.exp(params["logit_scale"])   # scalar glue
    return image_embedding, text_embedding, logit_scale_exp


# --------------------------------- main ---------------------------------------

if __name__ == "__main__":
    key = jax.random.PRNGKey(0)
    k_img, k_txt, k_par = jax.random.split(key, 3)

    B, H, W, T = 2, 16, 16, 8
    image = jax.random.normal(k_img, (B, C_IN, H, W), jnp.float32)   # NCHW
    text = jax.random.randint(k_txt, (B, T), 0, VOCAB, jnp.int32)

    params = init_params(k_par)

    img_emb, txt_emb, scale = get_model_forward(params, image, text)
    jax.block_until_ready((img_emb, txt_emb, scale))

    # pure-JAX reference for sanity (conv-then-GAP ordering, like the module)
    feat_ref = jnp.einsum("bchw,cf->bfhw", image, params["img_w"]) \
        + params["img_b"][0][None, :, None, None]
    ref_img = feat_ref.mean(axis=(2, 3))
    te = jnp.take(params["txt_embed"], text, axis=0)
    ref_txt = (te / jnp.maximum(
        jnp.linalg.norm(te, axis=-1, keepdims=True), EPS)).mean(axis=1)
    ref_scale = jnp.exp(params["logit_scale"])

    assert img_emb.shape == (B, C_FEAT) and txt_emb.shape == (B, C_TXT)
    np.testing.assert_allclose(np.asarray(img_emb), np.asarray(ref_img),
                               rtol=1e-4, atol=1e-4)
    np.testing.assert_allclose(np.asarray(txt_emb), np.asarray(ref_txt),
                               rtol=1e-4, atol=1e-4)
    np.testing.assert_allclose(np.asarray(scale), np.asarray(ref_scale),
                               rtol=1e-5, atol=1e-5)

    print("KERNEL_OK")
</pallas_src>

<mosaic_0001>
module attributes {stable_mosaic.version = 11 : i64} {
  func.func @clip_head_kernel(%arg0: memref<2x4x256xf32, #tpu.memory_space<vmem>>, %arg1: memref<5x32xf32, #tpu.memory_space<vmem>>, %arg2: memref<64x32xf32, #tpu.memory_space<vmem>>, %arg3: memref<2x8xi32, #tpu.memory_space<vmem>>, %arg4: memref<2x64xf32, #tpu.memory_space<vmem>>) attributes {dimension_semantics = [], scalar_prefetch = 0 : i64, scratch_operands = 0 : i64, tpu.core_type = #tpu.core_type<tc>} {
    %c0 = arith.constant 0 : index
    %c0_0 = arith.constant 0 : index
    %c0_1 = arith.constant 0 : index
    %0 = vector.load %arg0[%c0, %c0_0, %c0_1] : memref<2x4x256xf32, #tpu.memory_space<vmem>>, vector<2x4x256xf32>
    %cst = arith.constant dense<0.000000e+00> : vector<2x4xf32>
    %1 = vector.multi_reduction <add>, %0, %cst [2] : vector<2x4x256xf32> to vector<2x4xf32>
    %cst_2 = arith.constant 2.560000e+02 : f32
    %2 = vector.broadcast %cst_2 : f32 to vector<2x4xf32>
    %3 = arith.divf %1, %2 : vector<2x4xf32>
    %c0_3 = arith.constant 0 : index
    %c0_4 = arith.constant 0 : index
    %4 = vector.load %arg1[%c0_3, %c0_4] : memref<5x32xf32, #tpu.memory_space<vmem>>, vector<5x32xf32>
    %5 = vector.extract_strided_slice %4 {offsets = [0, 0], sizes = [4, 32], strides = [1, 1]} : vector<5x32xf32> to vector<4x32xf32>
    %cst_5 = arith.constant dense<0.000000e+00> : vector<2x32xf32>
    %6 = tpu.matmul %3, %5, %cst_5 {dimension_numbers = #tpu.dot_dimension_numbers<[1], [0], [0], [1], [0, 0, 1, 1], [], []>} : vector<2x4xf32>, vector<4x32xf32>, vector<2x32xf32> -> vector<2x32xf32>
    %7 = vector.extract_strided_slice %4 {offsets = [4, 0], sizes = [1, 32], strides = [1, 1]} : vector<5x32xf32> to vector<1x32xf32>
    %8 = vector.broadcast %7 : vector<1x32xf32> to vector<2x32xf32>
    %9 = arith.addf %6, %8 : vector<2x32xf32>
    %c0_6 = arith.constant 0 : index
    %c0_7 = arith.constant 0 : index
    %10 = vector.load %arg2[%c0_6, %c0_7] : memref<64x32xf32, #tpu.memory_space<vmem>>, vector<64x32xf32>
    %11 = arith.mulf %10, %10 : vector<64x32xf32>
    %cst_8 = arith.constant dense<0.000000e+00> : vector<64xf32>
    %12 = vector.multi_reduction <add>, %11, %cst_8 [1] : vector<64x32xf32> to vector<64xf32>
    %13 = vector.shape_cast %12 : vector<64xf32> to vector<64x1xf32>
    %cst_9 = arith.constant 1.000000e-24 : f32
    %14 = vector.broadcast %cst_9 : f32 to vector<64x1xf32>
    %15 = arith.maximumf %13, %14 : vector<64x1xf32>
    %16 = math.rsqrt %15 : vector<64x1xf32>
    %17 = vector.broadcast %16 : vector<64x1xf32> to vector<64x32xf32>
    %18 = arith.mulf %10, %17 : vector<64x32xf32>
    %c0_10 = arith.constant 0 : index
    %c0_11 = arith.constant 0 : index
    %19 = vector.load %arg3[%c0_10, %c0_11] : memref<2x8xi32, #tpu.memory_space<vmem>>, vector<2x8xi32>
    %20 = tpu.iota {dimensions = array<i32: 2>} : vector<2x8x64xi32>
    %21 = vector.shape_cast %19 : vector<2x8xi32> to vector<2x8x1xi32>
    %22 = vector.broadcast %21 : vector<2x8x1xi32> to vector<2x8x64xi32>
    %23 = arith.cmpi eq, %22, %20 : vector<2x8x64xi32>
    %24 = arith.extui %23 : vector<2x8x64xi1> to vector<2x8x64xi32>
    %25 = arith.sitofp %24 : vector<2x8x64xi32> to vector<2x8x64xf32>
    %cst_12 = arith.constant dense<0.000000e+00> : vector<2x64xf32>
    %26 = vector.multi_reduction <add>, %25, %cst_12 [1] : vector<2x8x64xf32> to vector<2x64xf32>
    %cst_13 = arith.constant dense<0.000000e+00> : vector<2x32xf32>
    %27 = tpu.matmul %26, %18, %cst_13 {dimension_numbers = #tpu.dot_dimension_numbers<[1], [0], [0], [1], [0, 0, 1, 1], [], []>} : vector<2x64xf32>, vector<64x32xf32>, vector<2x32xf32> -> vector<2x32xf32>
    %cst_14 = arith.constant 1.250000e-01 : f32
    %28 = vector.broadcast %cst_14 : f32 to vector<2x32xf32>
    %29 = arith.mulf %27, %28 : vector<2x32xf32>
    %30 = tpu.concatenate %9, %29 in 1 : vector<2x32xf32>, vector<2x32xf32> -> vector<2x64xf32>
    %c0_15 = arith.constant 0 : index
    %c0_16 = arith.constant 0 : index
    %31 = vector.load %arg4[%c0_15, %c0_16] : memref<2x64xf32, #tpu.memory_space<vmem>>, vector<2x64xf32>
    tpu.vector_store %arg4[%c0_15, %c0_16], %30 {strides = array<i32>} : memref<2x64xf32, #tpu.memory_space<vmem>>, vector<2x64xf32>,
    return
  }
}

</mosaic_0001>

<bundles_post_ra>
// kernel: tpu_custom_call.1
= control target key start
LH: loop header
LB: loop body
LE: loop exit
PB: predicated region body
PF: predicated region fallthrough
CT: control target
= control target key end

     0   :  { %vm151_vm0 = vcmask 261120   ;;  %s576_s0 = inlined_call_operand.vmem [shape: f32[2,4,256], index: 0, kind: input, shape index: {}]   ;;  %s577_s1 = inlined_call_operand.vmem [shape: f32[5,32], index: 1, kind: input, shape index: {}]   ;;  %s578_s2 = inlined_call_operand.vmem [shape: f32[64,32], index: 2, kind: input, shape index: {}]   ;;  %s579_s3 = inlined_call_operand.vmem [shape: s32[2,8], index: 3, kind: input, shape index: {}]   ;;  %s580_s4 = inlined_call_operand.hbm [shape: f32[2,64], index: 4, kind: output, shape index: {}]  }
   0x1   :  { %v465_v0 = vld [vmem:[%s578_s2 + $0x10] sm:$0xff]  ;;  %v470_v1 = vld [vmem:[%s578_s2] sm:$0xff]  ;;  %v475_v2 = vld [vmem:[%s578_s2 + $0x18] sm:$0xff] }
   0x2   :  { %v145_v3 = vmul.f32 %v465_v0, %v465_v0  ;;  %v143_v4 = vmul.f32 %v470_v1, %v470_v1  ;;  %v146_v5 = vmul.f32 %v475_v2, %v475_v2  ;;  %v486_v6 = vld [vmem:[%s578_s2 + $0x8] sm:$0xff]  ;;  %v498_v9 = vld [vmem:[%s578_s2 + $0x20] sm:$0xff] }
   0x3   :  { %v144_v7 = vmul.f32 %v486_v6, %v486_v6  ;;  %v493_v8 = vld [vmem:[%s578_s2 + $0x28] sm:$0xff] }
   0x4   :  { %v158_v10 = vsel %vm151_vm0, %v145_v3, 0.0  ;;  %v152_v11 = vsel %vm151_vm0, %v143_v4, 0.0 }
   0x5   :  { %9 = vsyncpa [#allocation3], 0  ;;  %159 = vadd.xlane.f32.xlu1 %v158_v10  ;;  %153 = vadd.xlane.f32.xlu0 %v152_v11  ;;  %v161_v12 = vsel %vm151_vm0, %v146_v5, 0.0  ;;  %v155_v13 = vsel %vm151_vm0, %v144_v7, 0.0  ;;  %v148_v14 = vmul.f32 %v493_v8, %v493_v8  ;;  %v147_v15 = vmul.f32 %v498_v9, %v498_v9  ;;  %v511_v16 = vld [vmem:[%s578_s2 + $0x38] sm:$0xff]  ;;  %v516_v17 = vld [vmem:[%s578_s2 + $0x30] sm:$0xff] }
   0x6   :  { %v150_v20 = vmul.f32 %v511_v16, %v511_v16  ;;  %v149_v21 = vmul.f32 %v516_v17, %v516_v17  ;;  %v41_v24 = vlaneseq  ;;  %v200_v27 = vld [vmem:[%s579_s3] sm:$0x3]  ;;  %v432_v31 = vmov 0.0   ;;  %v19_v33 = vld [vmem:[%s576_s0 + $0x8] sm:$0xff] }
   0x7   :  { %v167_v18 = vsel %vm151_vm0, %v148_v14, 0.0  ;;  %v164_v19 = vsel %vm151_vm0, %v147_v15, 0.0  ;;  %349 = vmatprep.subr.mxu0 %v432_v31  ;;  %v433_v32 = vmov 0.0|0.0   ;;  %vm434_vm1 = vmmov 0   ;;  %v18_v34 = vld [vmem:[%s576_s0] sm:$0xff]  ;;  %s435_s0 = smov 32  }
   0x8   :  { %v173_v22 = vsel %vm151_vm0, %v150_v20, 0.0  ;;  %v170_v23 = vsel %vm151_vm0, %v149_v21, 0.0  ;;  %v526_v25 = vshrl.u32 %v41_v24, 7  ;;  %373 = vmatprep.subr.bf16.mxu1 %v433_v32  ;;  %370 = vmatprep.mubr.msk.f32.mxu1 %vm434_vm1, %v432_v31  ;;  %v23_v35 = vcombine.high %v19_v33, %v19_v33  ;;  %v543_v43 = vld [vmem:[%s577_s1] sm:$0x1f]  ;;  %s436_s1 = smov [#allocation2]  }
   0x9   :  { %162 = vadd.xlane.f32.xlu1 %v161_v12  ;;  %156 = vadd.xlane.f32.xlu0 %v155_v13  ;;  %v22_v36 = vcombine.high %v18_v34, %v18_v34  ;;  %vm26_vm2 = vcmask 1043456   ;;  %v48_v60 = vand.u32 127, %v41_v24  ;;  %vm221_vm3 = vcmask 523264   ;;  %s325_s11 = sshll.u32 %s436_s1, 4  ;;  %s326_s11 = int_to_ptr.vmem [resolvable:$true] %s325_s11 }
   0xa   :  { %v210_v26 = vsub.s32 1, %v526_v25  ;;  %v203_v29 = vsub.s32 0, %v526_v25  ;;  %351 = vmatprep.mubr.msk.f32.mxu0 %vm434_vm1, %v432_v31  ;;  %v32_v37 = vsel %vm26_vm2, %v19_v33, 0.0  ;;  %v33_v38 = vsel %vm26_vm2, %v23_v35, 0.0  ;;  %350 = vmatpush3.msk.msra.mxu0 %vm26_vm2, %v543_v43  ;;  %s408_s12 = scalar_lea.vmem %s326_s11, 32  ;;  %p413_p1 = scmp.lt.s32.totalorder %s326_s11, %s326_s11 }
   0xb   :  { %v27_v39 = vsel %vm26_vm2, %v18_v34, 0.0  ;;  %v28_v40 = vsel %vm26_vm2, %v22_v36, 0.0  ;;  %v34_v41 = vadd.f32 %v33_v38, %v32_v37  ;;  %vm57_vm6 = vcmask 1041409   ;;  %p409_p0 = scmp.ne.s32.totalorder %s326_s11, %s408_s12  ;;  %p414_p2 = scmp.lt.s32.totalorder %s408_s12, %s408_s12 }
   0xc   :  { %v211_v28 = vrot.slane %v200_v27, %v210_v26  ;;  %v204_v30 = vrot.slane %v200_v27, %v203_v29  ;;  %v29_v42 = vadd.f32 %v28_v40, %v27_v39  ;;  %v51_v40 = vsub.s32 %v48_v60, %v526_v25 }
   0xd   :  { %168 = vadd.xlane.f32.xlu1 %v167_v18  ;;  %165 = vadd.xlane.f32.xlu0 %v164_v19  ;;  %vm59_vm7 = vcmask 31744   ;;  %vm317_vm8 = vcmask 517120   ;;  %p415_p3 = por %p414_p2, %p413_p1 }
   0xf   :  { %p416_p4 = pnand %p415_p3, %p409_p0 }
  0x11   :  { %174 = vadd.xlane.f32.xlu1 %v173_v22  ;;  %171 = vadd.xlane.f32.xlu0 %v170_v23 }
  0x22   :  { %213 = vbcast.lane.b32.xlu1 %v211_v28, 256 }
  0x27   :  { %206 = vbcast.lane.b32.xlu0 %v204_v30, 256 }
  0x46   :  { %35 = vadd.xlane.f32.xlu0 %v34_v41  ;;  %30 = vadd.xlane.f32.xlu1 %v29_v42 }
  0x92   :  { %v160_v44 = vpop.xlane.xlu1 %159  ;;  %v154_v45 = vpop.xlane.xlu0 %153 }
  0x93   :  { %v178_v46 = vmax.f32 %v160_v44, 1e-24  ;;  %v176_v47 = vmax.f32 %v154_v45, 1e-24 }
  0x95   :  { %392 = vrsqrt.f32 %v178_v46 }
  0x96   :  { %v163_v48 = vpop.xlane.xlu1 %162  ;;  %v157_v49 = vpop.xlane.xlu0 %156  ;;  %394 = vrsqrt.f32 %v176_v47 }
  0x97   :  { %v179_v50 = vmax.f32 %v163_v48, 1e-24  ;;  %v177_v51 = vmax.f32 %v157_v49, 1e-24 }
  0x99   :  { %396 = vrsqrt.f32 %v179_v50 }
  0x9a   :  { %398 = vrsqrt.f32 %v177_v51  ;;  %v169_v52 = vpop.xlane.xlu1 %168  ;;  %v166_v53 = vpop.xlane.xlu0 %165  ;;  %v43_v51 = vsub.s32 4, %v526_v25 }
  0x9b   :  { %v181_v54 = vmax.f32 %v169_v52, 1e-24  ;;  %v180_v55 = vmax.f32 %v166_v53, 1e-24 }
  0x9c   :  { %v44_v52 = vrot.slane %v543_v43, %v43_v51 }
  0x9d   :  { %400 = vrsqrt.f32 %v181_v54 }
  0x9e   :  { %402 = vrsqrt.f32 %v180_v55  ;;  %v175_v56 = vpop.xlane.xlu1 %174  ;;  %v172_v57 = vpop.xlane.xlu0 %171 }
  0x9f   :  { %v183_v58 = vmax.f32 %v175_v56, 1e-24  ;;  %v182_v59 = vmax.f32 %v172_v57, 1e-24  ;;  %v393_v61 = vpop.eup %392 }
  0xa0   :  { %v395_v62 = vpop.eup %394  ;;  %v194_v21 = vmul.f32 %v393_v61, %v465_v0 }
  0xa1   :  { %404 = vrsqrt.f32 %v183_v58  ;;  %v192_v13 = vmul.f32 %v395_v62, %v470_v1 }
  0xa2   :  { %406 = vrsqrt.f32 %v182_v59  ;;  %v214_v63 = vpop.permute.xlu1 %213  ;;  %v207_v3 = vpop.permute.xlu0 %206 }
  0xa3   :  { %v397_v4 = vpop.eup %396  ;;  %vm216_vm4 = vcmp.eq.s32.totalorder %v214_v63, %v48_v60  ;;  %vm215_vm5 = vcmp.eq.s32.totalorder %v207_v3, %v48_v60 }
  0xa4   :  { %v399_v5 = vpop.eup %398  ;;  %v336_v7 = vsel %vm216_vm4, 1.0, %v432_v31  ;;  %v335_v10 = vsel %vm215_vm5, 1.0, %v432_v31  ;;  %v195_v22 = vmul.f32 %v397_v4, %v475_v2 }
  0xa5   :  { %v229_v11 = vsel %vm221_vm3, %v336_v7, 0.0  ;;  %v222_v12 = vsel %vm221_vm3, %v335_v10, 0.0  ;;  %v193_v14 = vmul.f32 %v399_v5, %v486_v6 }
  0xa6   :  { %v230_v15 = vrot.slane %v229_v11, 4  ;;  %v223_v18 = vrot.slane %v222_v12, 4  ;;  %v377_v30 = vpack.c.bf16 %v195_v22, %v194_v21 }
  0xa7   :  { %v401_v19 = vpop.eup %400  ;;  %v374_v20 = vpack.c.bf16 %v193_v14, %v192_v13 }
  0xa8   :  { %v403_v23 = vpop.eup %402  ;;  %v231_v24 = vadd.f32 %v230_v15, %v229_v11  ;;  %v224_v26 = vadd.f32 %v223_v18, %v222_v12  ;;  %v197_v28 = vmul.f32 %v401_v19, %v493_v8 }
  0xa9   :  { %375 = vmatpush3.bf16.msra.mxu1 %v374_v20  ;;  %v196_v27 = vmul.f32 %v403_v23, %v498_v9 }
  0xaa   :  { %v232_v29 = vrot.slane %v231_v24, 2  ;;  %v225_v1 = vrot.slane %v224_v26, 2  ;;  %376 = vmatprep.subr.bf16.mxu1 %v433_v32 }
  0xab   :  { %v405_v6 = vpop.eup %404  ;;  %v380_v0 = vpack.c.bf16 %v197_v28, %v196_v27 }
  0xac   :  { %v407_v31 = vpop.eup %406  ;;  %v233_v33 = vadd.f32 %v232_v29, %v231_v24  ;;  %v226_v34 = vadd.f32 %v225_v1, %v224_v26  ;;  %v199_v35 = vmul.f32 %v405_v6, %v511_v16 }
  0xad   :  { %378 = vmatpush3.bf16.msra.mxu1 %v377_v30  ;;  %v198_v2 = vmul.f32 %v407_v31, %v516_v17 }
  0xae   :  { %379 = vmatprep.subr.bf16.mxu1 %v433_v32  ;;  %v234_v9 = vrot.slane %v233_v33, 1  ;;  %v227_v36 = vrot.slane %v226_v34, 1 }
  0xaf   :  { %v383_v8 = vpack.c.bf16 %v199_v35, %v198_v2 }
  0xb0   :  { %v235_v37 = vadd.f32 %v234_v9, %v233_v33  ;;  %v228_v38 = vadd.f32 %v227_v36, %v226_v34 }
  0xb1   :  { %381 = vmatpush3.bf16.msra.mxu1 %v380_v0 }
  0xb2   :  { %382 = vmatprep.subr.bf16.mxu1 %v433_v32  ;;  %v238_v39 = vsel %vm57_vm6, %v235_v37, %v228_v38 }
  0xb5   :  { %384 = vmatpush3.bf16.msra.mxu1 %v383_v8 }
  0xb8   :  { %371 = vmatmul.mubr.msk.f32.vlgmr.msra.gmra.mrb[0].mxu1 %vm221_vm3, %v238_v39 }
  0xd3   :  { %v36_v17 = vpop.xlane.xlu0 %35  ;;  %v31_v41 = vpop.xlane.xlu1 %30 }
  0xd4   :  { %v39_v16 = vmul.f32 0.00390625, %v36_v17  ;;  %v38_v42 = vmul.f32 0.00390625, %v31_v41 }
  0xd6   :  { %v56_v44 = vrot.slane %v39_v16, %v51_v40  ;;  %v52_v45 = vrot.slane %v38_v42, %v51_v40 }
  0xd8   :  { %v58_v46 = vsel %vm57_vm6, %v56_v44, %v52_v45 }
  0xd9   :  { %352 = vmatmul.mubr.msk.f32.vlgmr.msra.gmra.mrb[0].mxu0 %vm59_vm7, %v58_v46 }
 0x18b   :  { %v307_v47 = vpop.f32.mrb[0].mxu1 }
 0x18c   :  { %v311_v32 = vmul.f32 0.125, %v307_v47  ;;  %v372_v48 = vpop.f32.mrb[1].mxu1 }
 0x18e   :  { %313 = vrot.lane.b32.xlu0 %v311_v32, %s435_s0 }
 0x1ac   :  { %v131_v49 = vpop.f32.mrb[0].mxu0 }
 0x1ad   :  { %v353_v50 = vpop.f32.mrb[1].mxu0  ;;  %v132_v53 = vadd.f32 %v131_v49, %v44_v52 }
 0x200   :  { %v314_v54 = vpop.permute.xlu0 %313 }
 0x201   :  { %v316_v55 = vsel %vm151_vm0, %v132_v53, %v314_v54 }
 0x202   :  { %318 = vst.msk [vmem:[#allocation2] sm:$0x3] %vm317_vm8, %v316_v55 }
 0x203   :  { %419 = shalt.err (!%p416_p4)
}
 0x204   :  { %s420_s15 = scalar_lea.hbm %s580_s4, 32 }
 0x205   :  { %p421_p5 = scmp.ne.s32.totalorder %s580_s4, %s420_s15  ;;  %p424_p6 = scmp.lt.u32.totalorder %s420_s15, %s580_s4 }
 0x207   :  { %p426_p7 = pnand %p424_p6, %p421_p5 }
 0x209   :  { %429 = shalt.err (!%p426_p7)
}
 0x20a   :  { %328 = dma.vmem_to_hbm [thread:$0]  %s326_s11, 32, %s580_s4, [#allocation3]  }
 0x20b   :  { %430 = dma.done.wait [#allocation3], 32  }
 0x20c   :  { %431 = vsyncadd [#allocation3], 4294967264 }
 0x20d   :  { %332 = vsyncpa [#allocation3], 1 }

</bundles_post_ra>
